<compile_context>
chip_gen: v5e
topology: v5e:2x2
jax: 0.10.0
libtpu: 0.0.40
codegen_flags: <defaults>
</compile_context>

<pallas_src>
import functools
import math

import jax
import jax.numpy as jnp
from jax import lax
from jax.experimental import pallas as pl
from jax.experimental.pallas import tpu as pltpu


def _necto_kernel(
    q_ref, kv_ref, bias_ref,
    wq_ref, bq_ref,
    wk_ref, bk_ref,
    wv_ref, bv_ref,
    wctx_ref, wres_ref, bout_ref,
    o_ref,
    *, batch, nq, nkv,
):
    f32 = jnp.float32
    mm_dtype = wq_ref.dtype          # matmul operand dtype (bf16 by default)

    q = q_ref[...]                   # [B*Nq,  Fq ]   (mm_dtype)
    kv = kv_ref[...]                 # [B*Nkv, Fkv]   (mm_dtype)

    # Folded projections.  Softmax scale is already folded into wq/bq.
    Q = (jnp.dot(q, wq_ref[...], preferred_element_type=f32) + bq_ref[...]).astype(mm_dtype)   # [B*Nq,  D]
    K = (jnp.dot(kv, wk_ref[...], preferred_element_type=f32) + bk_ref[...]).astype(mm_dtype)  # [B*Nkv, D]
    V = (jnp.dot(kv, wv_ref[...], preferred_element_type=f32) + bv_ref[...]).astype(mm_dtype)  # [B*Nkv, D]

    # Masked single-head cross-attention, per batch element (static unrolled loop).
    ctx_parts = []
    for b in range(batch):
        Qb = Q[b * nq:(b + 1) * nq, :]          # [Nq,  D]
        Kb = K[b * nkv:(b + 1) * nkv, :]        # [Nkv, D]
        Vb = V[b * nkv:(b + 1) * nkv, :]        # [Nkv, D]

        # scores = Q K^T (contract last dims; scale already applied via wq/bq)
        s = lax.dot_general(Qb, Kb, (((1,), (1,)), ((), ())),
                            preferred_element_type=f32)           # [Nq, Nkv] f32
        s = s + bias_ref[b * nq:(b + 1) * nq, :]                   # additive mask bias (f32)

        # numerically stable softmax over keys (kept in f32)
        s_max = jnp.max(s, axis=-1, keepdims=True)
        p = jnp.exp(s - s_max)
        denom = jnp.sum(p, axis=-1, keepdims=True)
        attn = (p * pl.reciprocal(denom, approx=True)).astype(mm_dtype)

        ctx_parts.append(jnp.dot(attn, Vb, preferred_element_type=f32))   # [Nq, D] f32

    ctx = jnp.concatenate(ctx_parts, axis=0).astype(mm_dtype)             # [B*Nq, D]

    # Folded (output projection + residual + head), lane-padded output.
    out = (jnp.dot(ctx, wctx_ref[...], preferred_element_type=f32)
           + jnp.dot(q, wres_ref[...], preferred_element_type=f32)
           + bout_ref[...])                                                # [B*Nq, Dout_pad] f32
    o_ref[...] = out.astype(o_ref.dtype)


def necto_forward(q, kv, m, params, *, matmul_dtype=jnp.bfloat16):
    B, Nq, Fq = q.shape
    _, Nkv, Fkv = kv.shape
    D = params["wq_pre"].shape[1]
    Dout = params["wout"].shape[1]
    LANES = 128
    Dout_pad = pl.cdiv(Dout, LANES) * LANES

    f32 = jnp.float32
    scale = 1.0 / math.sqrt(D)       # trace-time Python constant

    # --- fold chained Linears (in f32), then cast matrices for the MXU ----------
    wq_eff = (params["wq_pre"] @ params["wq"]) * scale                     # [Fq,  D]
    bq_eff = (params["bq_pre"] @ params["wq"] + params["bq"]) * scale      # [1,   D]
    wk_eff = params["wkv_pre"] @ params["wk"]                              # [Fkv, D]
    bk_eff = params["bkv_pre"] @ params["wk"] + params["bk"]               # [1,   D]
    wv_eff = params["wkv_pre"] @ params["wv"]                              # [Fkv, D]
    bv_eff = params["bkv_pre"] @ params["wv"] + params["bv"]               # [1,   D]
    wctx = params["wo"] @ params["wout"]                                   # [D,   Dout]
    wres = params["wq_pre"] @ params["wout"]                               # [Fq,  Dout]
    bout = (params["bo"] + params["bq_pre"]) @ params["wout"] + params["bout"]  # [1, Dout]

    # lane-pad the head so the single output store is lane-dense (sliced off below)
    pad = Dout_pad - Dout
    wctx = jnp.pad(wctx, ((0, 0), (0, pad)))
    wres = jnp.pad(wres, ((0, 0), (0, pad)))
    bout = jnp.pad(bout, ((0, 0), (0, pad)))

    # --- flatten batch, precompute additive mask bias ---------------------------
    q2 = q.reshape(B * Nq, Fq).astype(matmul_dtype)
    kv2 = kv.reshape(B * Nkv, Fkv).astype(matmul_dtype)
    bias = jnp.where(m > 0.5, jnp.float32(-1e9), jnp.float32(0.0))         # [B, Nkv]
    bias = jnp.broadcast_to(bias[:, None, :], (B, Nq, Nkv)).reshape(B * Nq, Nkv)

    weights = [
        wq_eff.astype(matmul_dtype), bq_eff.astype(f32),
        wk_eff.astype(matmul_dtype), bk_eff.astype(f32),
        wv_eff.astype(matmul_dtype), bv_eff.astype(f32),
        wctx.astype(matmul_dtype), wres.astype(matmul_dtype), bout.astype(f32),
    ]
    inputs = [q2, kv2, bias] + weights

    kernel = functools.partial(_necto_kernel, batch=B, nq=Nq, nkv=Nkv)

    out = pl.pallas_call(
        kernel,
        out_shape=jax.ShapeDtypeStruct((B * Nq, Dout_pad), jnp.float32),
        in_specs=[pl.BlockSpec(memory_space=pltpu.MemorySpace.VMEM)
                  for _ in range(len(inputs))],
        out_specs=pl.BlockSpec(memory_space=pltpu.MemorySpace.VMEM),
    )(*inputs)

    return out[:, :Dout].reshape(B, Nq, Dout)


def necto_reference(q, kv, m, params):
    """Pure-JAX f32 reference of the original (unfolded) forward pass."""
    qe = q @ params["wq_pre"] + params["bq_pre"]
    kve = kv @ params["wkv_pre"] + params["bkv_pre"]
    Q = qe @ params["wq"] + params["bq"]
    K = kve @ params["wk"] + params["bk"]
    V = kve @ params["wv"] + params["bv"]
    d = Q.shape[-1]
    scores = jnp.einsum("bqd,bkd->bqk", Q, K) / jnp.sqrt(jnp.float32(d))
    bias = jnp.where(m > 0.5, jnp.float32(-1e9), jnp.float32(0.0))[:, None, :]
    attn = jax.nn.softmax(scores + bias, axis=-1)
    ctx = jnp.einsum("bqk,bkd->bqd", attn, V)
    earl_out = ctx @ params["wo"] + params["bo"] + qe
    return earl_out @ params["wout"] + params["bout"]


def init_params(key, fq, fkv, d_model, d_out):
    """Deterministic synthetic parameters (shapes follow the EARL + Linear head)."""
    keys = jax.random.split(key, 8)

    def lin(k, fan_in, fan_out):
        kw, kb = jax.random.split(k)
        scale = 1.0 / jnp.sqrt(jnp.float32(fan_in))
        w = jax.random.uniform(kw, (fan_in, fan_out), jnp.float32, -scale, scale)
        b = jax.random.uniform(kb, (1, fan_out), jnp.float32, -scale, scale)
        return w, b

    p = {}
    p["wq_pre"], p["bq_pre"] = lin(keys[0], fq, d_model)
    p["wkv_pre"], p["bkv_pre"] = lin(keys[1], fkv, d_model)
    p["wq"], p["bq"] = lin(keys[2], d_model, d_model)
    p["wk"], p["bk"] = lin(keys[3], d_model, d_model)
    p["wv"], p["bv"] = lin(keys[4], d_model, d_model)
    p["wo"], p["bo"] = lin(keys[5], d_model, d_model)
    p["wout"], p["bout"] = lin(keys[6], d_model, d_out)
    return p


if __name__ == "__main__":
    # Small shapes consistent with the forward: (q, kv, m) triple + Linear head.
    B, Nq, Nkv = 2, 8, 16
    Fq, Fkv = 32, 24
    D_MODEL, D_OUT = 32, 8

    key = jax.random.PRNGKey(0)
    k_q, k_kv, k_m, k_p = jax.random.split(key, 4)

    q = jax.random.normal(k_q, (B, Nq, Fq), jnp.float32)
    kv = jax.random.normal(k_kv, (B, Nkv, Fkv), jnp.float32)
    # mask: 1.0 => padded / invalid key-value entity
    m = (jax.random.uniform(k_m, (B, Nkv)) > 0.75).astype(jnp.float32)

    params = init_params(k_p, Fq, Fkv, D_MODEL, D_OUT)

    out = jax.jit(necto_forward)(q, kv, m, params)
    jax.block_until_ready(out)

    assert out.shape == (B, Nq, D_OUT)
    assert jnp.all(jnp.isfinite(out))

    # Sanity-check against the pure-JAX f32 reference (loose tol: bf16 matmuls).
    ref = necto_reference(q, kv, m, params)
    max_err = float(jnp.max(jnp.abs(out - ref)))
    assert max_err < 0.2, f"kernel/reference mismatch: max abs err = {max_err}"

    print("KERNEL_OK")
</pallas_src>

<mosaic_0001>
module attributes {stable_mosaic.version = 11 : i64} {
  func.func @_necto_kernel(%arg0: memref<16x32xbf16, #tpu.memory_space<vmem>>, %arg1: memref<32x24xbf16, #tpu.memory_space<vmem>>, %arg2: memref<16x16xf32, #tpu.memory_space<vmem>>, %arg3: memref<32x32xbf16, #tpu.memory_space<vmem>>, %arg4: memref<1x32xf32, #tpu.memory_space<vmem>>, %arg5: memref<24x32xbf16, #tpu.memory_space<vmem>>, %arg6: memref<1x32xf32, #tpu.memory_space<vmem>>, %arg7: memref<24x32xbf16, #tpu.memory_space<vmem>>, %arg8: memref<1x32xf32, #tpu.memory_space<vmem>>, %arg9: memref<32x128xbf16, #tpu.memory_space<vmem>>, %arg10: memref<32x128xbf16, #tpu.memory_space<vmem>>, %arg11: memref<1x128xf32, #tpu.memory_space<vmem>>, %arg12: memref<16x128xf32, #tpu.memory_space<vmem>>) attributes {dimension_semantics = [], scalar_prefetch = 0 : i64, scratch_operands = 0 : i64, tpu.core_type = #tpu.core_type<tc>} {
    %c0 = arith.constant 0 : index
    %c0_0 = arith.constant 0 : index
    %0 = vector.load %arg0[%c0, %c0_0] : memref<16x32xbf16, #tpu.memory_space<vmem>>, vector<16x32xbf16>
    %c0_1 = arith.constant 0 : index
    %c0_2 = arith.constant 0 : index
    %1 = vector.load %arg1[%c0_1, %c0_2] : memref<32x24xbf16, #tpu.memory_space<vmem>>, vector<32x24xbf16>
    %c0_3 = arith.constant 0 : index
    %c0_4 = arith.constant 0 : index
    %2 = vector.load %arg3[%c0_3, %c0_4] : memref<32x32xbf16, #tpu.memory_space<vmem>>, vector<32x32xbf16>
    %cst = arith.constant dense<0.000000e+00> : vector<16x32xf32>
    %3 = tpu.matmul %0, %2, %cst {dimension_numbers = #tpu.dot_dimension_numbers<[1], [0], [0], [1], [0, 0, 1, 1], [], []>} : vector<16x32xbf16>, vector<32x32xbf16>, vector<16x32xf32> -> vector<16x32xf32>
    %c0_5 = arith.constant 0 : index
    %c0_6 = arith.constant 0 : index
    %4 = vector.load %arg4[%c0_5, %c0_6] : memref<1x32xf32, #tpu.memory_space<vmem>>, vector<1x32xf32>
    %5 = vector.broadcast %4 : vector<1x32xf32> to vector<16x32xf32>
    %6 = arith.addf %3, %5 : vector<16x32xf32>
    %7 = arith.truncf %6 : vector<16x32xf32> to vector<16x32xbf16>
    %c0_7 = arith.constant 0 : index
    %c0_8 = arith.constant 0 : index
    %8 = vector.load %arg5[%c0_7, %c0_8] : memref<24x32xbf16, #tpu.memory_space<vmem>>, vector<24x32xbf16>
    %cst_9 = arith.constant dense<0.000000e+00> : vector<32x32xf32>
    %9 = tpu.matmul %1, %8, %cst_9 {dimension_numbers = #tpu.dot_dimension_numbers<[1], [0], [0], [1], [0, 0, 1, 1], [], []>} : vector<32x24xbf16>, vector<24x32xbf16>, vector<32x32xf32> -> vector<32x32xf32>
    %c0_10 = arith.constant 0 : index
    %c0_11 = arith.constant 0 : index
    %10 = vector.load %arg6[%c0_10, %c0_11] : memref<1x32xf32, #tpu.memory_space<vmem>>, vector<1x32xf32>
    %11 = vector.broadcast %10 : vector<1x32xf32> to vector<32x32xf32>
    %12 = arith.addf %9, %11 : vector<32x32xf32>
    %13 = arith.truncf %12 : vector<32x32xf32> to vector<32x32xbf16>
    %c0_12 = arith.constant 0 : index
    %c0_13 = arith.constant 0 : index
    %14 = vector.load %arg7[%c0_12, %c0_13] : memref<24x32xbf16, #tpu.memory_space<vmem>>, vector<24x32xbf16>
    %cst_14 = arith.constant dense<0.000000e+00> : vector<32x32xf32>
    %15 = tpu.matmul %1, %14, %cst_14 {dimension_numbers = #tpu.dot_dimension_numbers<[1], [0], [0], [1], [0, 0, 1, 1], [], []>} : vector<32x24xbf16>, vector<24x32xbf16>, vector<32x32xf32> -> vector<32x32xf32>
    %c0_15 = arith.constant 0 : index
    %c0_16 = arith.constant 0 : index
    %16 = vector.load %arg8[%c0_15, %c0_16] : memref<1x32xf32, #tpu.memory_space<vmem>>, vector<1x32xf32>
    %17 = vector.broadcast %16 : vector<1x32xf32> to vector<32x32xf32>
    %18 = arith.addf %15, %17 : vector<32x32xf32>
    %19 = arith.truncf %18 : vector<32x32xf32> to vector<32x32xbf16>
    %20 = vector.extract_strided_slice %7 {offsets = [0, 0], sizes = [8, 32], strides = [1, 1]} : vector<16x32xbf16> to vector<8x32xbf16>
    %21 = vector.extract_strided_slice %13 {offsets = [0, 0], sizes = [16, 32], strides = [1, 1]} : vector<32x32xbf16> to vector<16x32xbf16>
    %22 = vector.extract_strided_slice %19 {offsets = [0, 0], sizes = [16, 32], strides = [1, 1]} : vector<32x32xbf16> to vector<16x32xbf16>
    %cst_17 = arith.constant dense<0.000000e+00> : vector<8x16xf32>
    %23 = tpu.matmul %20, %21, %cst_17 {dimension_numbers = #tpu.dot_dimension_numbers<[1], [1], [0], [0], [0, 0, 1, 0], [], []>} : vector<8x32xbf16>, vector<16x32xbf16>, vector<8x16xf32> -> vector<8x16xf32>
    %c0_18 = arith.constant 0 : index
    %c0_19 = arith.constant 0 : index
    %24 = vector.load %arg2[%c0_18, %c0_19] : memref<16x16xf32, #tpu.memory_space<vmem>>, vector<8x16xf32>
    %25 = arith.addf %23, %24 : vector<8x16xf32>
    %cst_20 = arith.constant dense<0xFF800000> : vector<8xf32>
    %26 = vector.multi_reduction <maximumf>, %25, %cst_20 [1] : vector<8x16xf32> to vector<8xf32>
    %27 = vector.shape_cast %26 : vector<8xf32> to vector<8x1xf32>
    %28 = vector.broadcast %27 : vector<8x1xf32> to vector<8x16xf32>
    %29 = arith.subf %25, %28 : vector<8x16xf32>
    %30 = math.exp %29 : vector<8x16xf32>
    %cst_21 = arith.constant dense<0.000000e+00> : vector<8xf32>
    %31 = vector.multi_reduction <add>, %30, %cst_21 [1] : vector<8x16xf32> to vector<8xf32>
    %32 = vector.shape_cast %31 : vector<8xf32> to vector<8x1xf32>
    %33 = tpu.reciprocal %32 {approx = true} : vector<8x1xf32> -> vector<8x1xf32>
    %34 = vector.broadcast %33 : vector<8x1xf32> to vector<8x16xf32>
    %35 = arith.mulf %30, %34 : vector<8x16xf32>
    %36 = arith.truncf %35 : vector<8x16xf32> to vector<8x16xbf16>
    %cst_22 = arith.constant dense<0.000000e+00> : vector<8x32xf32>
    %37 = tpu.matmul %36, %22, %cst_22 {dimension_numbers = #tpu.dot_dimension_numbers<[1], [0], [0], [1], [0, 0, 1, 1], [], []>} : vector<8x16xbf16>, vector<16x32xbf16>, vector<8x32xf32> -> vector<8x32xf32>
    %38 = vector.extract_strided_slice %7 {offsets = [8, 0], sizes = [8, 32], strides = [1, 1]} : vector<16x32xbf16> to vector<8x32xbf16>
    %39 = vector.extract_strided_slice %13 {offsets = [16, 0], sizes = [16, 32], strides = [1, 1]} : vector<32x32xbf16> to vector<16x32xbf16>
    %40 = vector.extract_strided_slice %19 {offsets = [16, 0], sizes = [16, 32], strides = [1, 1]} : vector<32x32xbf16> to vector<16x32xbf16>
    %cst_23 = arith.constant dense<0.000000e+00> : vector<8x16xf32>
    %41 = tpu.matmul %38, %39, %cst_23 {dimension_numbers = #tpu.dot_dimension_numbers<[1], [1], [0], [0], [0, 0, 1, 0], [], []>} : vector<8x32xbf16>, vector<16x32xbf16>, vector<8x16xf32> -> vector<8x16xf32>
    %c8 = arith.constant 8 : index
    %c0_24 = arith.constant 0 : index
    %42 = vector.load %arg2[%c8, %c0_24] : memref<16x16xf32, #tpu.memory_space<vmem>>, vector<8x16xf32>
    %43 = arith.addf %41, %42 : vector<8x16xf32>
    %cst_25 = arith.constant dense<0xFF800000> : vector<8xf32>
    %44 = vector.multi_reduction <maximumf>, %43, %cst_25 [1] : vector<8x16xf32> to vector<8xf32>
    %45 = vector.shape_cast %44 : vector<8xf32> to vector<8x1xf32>
    %46 = vector.broadcast %45 : vector<8x1xf32> to vector<8x16xf32>
    %47 = arith.subf %43, %46 : vector<8x16xf32>
    %48 = math.exp %47 : vector<8x16xf32>
    %cst_26 = arith.constant dense<0.000000e+00> : vector<8xf32>
    %49 = vector.multi_reduction <add>, %48, %cst_26 [1] : vector<8x16xf32> to vector<8xf32>
    %50 = vector.shape_cast %49 : vector<8xf32> to vector<8x1xf32>
    %51 = tpu.reciprocal %50 {approx = true} : vector<8x1xf32> -> vector<8x1xf32>
    %52 = vector.broadcast %51 : vector<8x1xf32> to vector<8x16xf32>
    %53 = arith.mulf %48, %52 : vector<8x16xf32>
    %54 = arith.truncf %53 : vector<8x16xf32> to vector<8x16xbf16>
    %cst_27 = arith.constant dense<0.000000e+00> : vector<8x32xf32>
    %55 = tpu.matmul %54, %40, %cst_27 {dimension_numbers = #tpu.dot_dimension_numbers<[1], [0], [0], [1], [0, 0, 1, 1], [], []>} : vector<8x16xbf16>, vector<16x32xbf16>, vector<8x32xf32> -> vector<8x32xf32>
    %56 = tpu.concatenate %37, %55 in 0 : vector<8x32xf32>, vector<8x32xf32> -> vector<16x32xf32>
    %57 = arith.truncf %56 : vector<16x32xf32> to vector<16x32xbf16>
    %c0_28 = arith.constant 0 : index
    %c0_29 = arith.constant 0 : index
    %58 = vector.load %arg9[%c0_28, %c0_29] : memref<32x128xbf16, #tpu.memory_space<vmem>>, vector<32x128xbf16>
    %cst_30 = arith.constant dense<0.000000e+00> : vector<16x128xf32>
    %59 = tpu.matmul %57, %58, %cst_30 {dimension_numbers = #tpu.dot_dimension_numbers<[1], [0], [0], [1], [0, 0, 1, 1], [], []>} : vector<16x32xbf16>, vector<32x128xbf16>, vector<16x128xf32> -> vector<16x128xf32>
    %c0_31 = arith.constant 0 : index
    %c0_32 = arith.constant 0 : index
    %60 = vector.load %arg10[%c0_31, %c0_32] : memref<32x128xbf16, #tpu.memory_space<vmem>>, vector<32x128xbf16>
    %cst_33 = arith.constant dense<0.000000e+00> : vector<16x128xf32>
    %61 = tpu.matmul %0, %60, %cst_33 {dimension_numbers = #tpu.dot_dimension_numbers<[1], [0], [0], [1], [0, 0, 1, 1], [], []>} : vector<16x32xbf16>, vector<32x128xbf16>, vector<16x128xf32> -> vector<16x128xf32>
    %62 = arith.addf %59, %61 : vector<16x128xf32>
    %c0_34 = arith.constant 0 : index
    %c0_35 = arith.constant 0 : index
    %63 = vector.load %arg11[%c0_34, %c0_35] : memref<1x128xf32, #tpu.memory_space<vmem>>, vector<1x128xf32>
    %64 = vector.broadcast %63 : vector<1x128xf32> to vector<16x128xf32>
    %65 = arith.addf %62, %64 : vector<16x128xf32>
    %c0_36 = arith.constant 0 : index
    %c0_37 = arith.constant 0 : index
    %66 = vector.load %arg12[%c0_36, %c0_37] : memref<16x128xf32, #tpu.memory_space<vmem>>, vector<16x128xf32>
    tpu.vector_store %arg12[%c0_36, %c0_37], %65 {strides = array<i32>} : memref<16x128xf32, #tpu.memory_space<vmem>>, vector<16x128xf32>,
    return
  }
}

</mosaic_0001>

<bundles_post_ra>
// kernel: necto_forward.1
= control target key start
LH: loop header
LB: loop body
LE: loop exit
PB: predicated region body
PF: predicated region fallthrough
CT: control target
= control target key end

     0   :  { %vm126_vm0 = vcmask 1043456   ;;  %vm73_vm1 = vcmask 261120   ;;  %vm119_vm2 = vcmask 195584   ;;  %vm220_vm3 = vcmask 130048   ;;  %s619_s5 = inlined_call_operand.vmem [shape: bf16[24,32], index: 5, kind: input, shape index: {}]   ;;  %s620_s3 = inlined_call_operand.vmem [shape: bf16[32,32], index: 3, kind: input, shape index: {}]   ;;  %s621_s6 = inlined_call_operand.vmem [shape: f32[1,32], index: 6, kind: input, shape index: {}]   ;;  %s622_s0 = inlined_call_operand.vmem [shape: bf16[16,32], index: 0, kind: input, shape index: {}]   ;;  %s623_s1 = inlined_call_operand.vmem [shape: bf16[32,24], index: 1, kind: input, shape index: {}]   ;;  %s624_s4 = inlined_call_operand.vmem [shape: f32[1,32], index: 4, kind: input, shape index: {}]   ;;  %s625_s7 = inlined_call_operand.vmem [shape: bf16[24,32], index: 7, kind: input, shape index: {}]   ;;  %s626_s2 = inlined_call_operand.vmem [shape: f32[16,16], index: 2, kind: input, shape index: {}]   ;;  %s627_s8 = inlined_call_operand.vmem [shape: f32[1,32], index: 8, kind: input, shape index: {}]   ;;  %s628_s9 = inlined_call_operand.vmem [shape: bf16[32,128], index: 9, kind: input, shape index: {}]   ;;  %s629_s10 = inlined_call_operand.vmem [shape: bf16[32,128], index: 10, kind: input, shape index: {}]   ;;  %s630_s11 = inlined_call_operand.vmem [shape: f32[1,128], index: 11, kind: input, shape index: {}]   ;;  %s631_s12 = inlined_call_operand.vmem [shape: f32[16,128], index: 12, kind: output, shape index: {}]  }
   0x1   :  { %v95_v0 = vld [vmem:[%s619_s5 + $0x8] sm:$0xf]  ;;  %v448_v4 = vld [vmem:[%s620_s3] sm:$0xff] }
   0x2   :  { %v115_v1 = vunpack.c.l.b16 %v95_v0  ;;  %v449_v2 = vld [vmem:[%s620_s3 + $0x8] sm:$0xff]  ;;  %v450_v6 = vld [vmem:[%s619_s5] sm:$0xff] }
   0x3   :  { %83 = vmatpush.bf16.msra.mxu0 %v449_v2  ;;  %v549_v7 = vld [vmem:[%s622_s0] sm:$0xff]  ;;  %v447_v9 = vld [vmem:[%s623_s1 + $0x8] sm:$0xff] }
   0x4   :  { %v117_v3 = vpack.c.b16 %v115_v1, %v115_v1  ;;  %v446_v8 = vld [vmem:[%s623_s1] sm:$0xff]  ;;  %v155_v38 = vld [vmem:[%s625_s7 + $0x8] sm:$0xf] }
   0x5   :  { %v456_v11 = vld [vmem:[%s621_s6] ss:$0 sm:$0xff]  ;;  %v165_v39 = vunpack.c.l.b16 %v155_v38  ;;  %v255_v48 = vld [vmem:[%s626_s2 + $0x8] sm:$0xff] }
   0x6   :  { %v128_v5 = vsel %vm126_vm0, %v117_v3, 0  ;;  %v457_v19 = vld [vmem:[%s624_s4] ss:$0 sm:$0xff] }
   0x7   :  { %136 = vmatpush.bf16.msra.mxu1 %v128_v5  ;;  %84 = vmatpush.bf16.msra.mxu0 %v448_v4  ;;  %v167_v40 = vpack.c.b16 %v165_v39, %v165_v39  ;;  %v195_v42 = vld [vmem:[%s626_s2] sm:$0xff] }
   0x8   :  { %v451_v43 = vld [vmem:[%s625_s7] sm:$0xff] }
   0x9   :  { %v170_v41 = vsel %vm126_vm0, %v167_v40, 0  ;;  %v458_v59 = vld [vmem:[%s627_s8] ss:$0 sm:$0xff] }
   0xa   :  { %402 = vmatmul.msk.bf16.vlgmr.msra.gmra.mxu0 %vm73_vm1, %v549_v7  ;;  %178 = vmatpush.bf16.msra.mxu2 %v170_v41 }
   0xb   :  { %137 = vmatpush.bf16.msra.mxu1 %v450_v6 }
   0xe   :  { %415 = vmatmul.msk.bf16.vlgmr.msra.gmra.mxu1 %vm119_vm2, %v446_v8  ;;  %179 = vmatpush.bf16.msra.mxu2 %v451_v43 }
  0x11   :  { %421 = vmatmul.msk.bf16.vlgmr.msra.gmra.mxu2 %vm119_vm2, %v446_v8 }
  0x1e   :  { %416 = vmatmul.msk.bf16.gmra.mxu1 %vm119_vm2, %v447_v9 }
  0x21   :  { %422 = vmatmul.msk.bf16.gmra.mxu2 %vm119_vm2, %v447_v9 }
  0x87   :  { %v86_v22 = vpop.f32.mrf.mxu0 }
  0x88   :  { %v87_v24 = vadd.f32 %v457_v19, %v86_v22 }
  0x8a   :  { %v91_v26 = vpack.c.bf16 %v87_v24, %v87_v24 }
  0x8b   :  { %v139_v10 = vpop.f32.mrf.mxu1 }
  0x8c   :  { %v140_v12 = vadd.f32 %v456_v11, %v139_v10 }
  0x8e   :  { %v149_v14 = vpack.c.bf16 %v140_v12, %v140_v12 }
  0x8f   :  { %v88_v34 = vpop.f32.mrf.mxu0 }
  0x90   :  { %v198_v17 = vunpack.c.l.b16 %v149_v14  ;;  %v89_v36 = vadd.f32 %v457_v19, %v88_v34  ;;  %v453_v19 = vld [vmem:[%s628_s9 + $0x8] sm:$0xff] }
  0x91   :  { %370 = vmatpush.bf16.msrb.mxu2 %v453_v19 }
  0x92   :  { %v92_v37 = vpack.c.bf16 %v89_v36, %v89_v36 }
  0x93   :  { %v141_v13 = vpop.f32.mrf.mxu1 }
  0x94   :  { %v142_v15 = vadd.f32 %v456_v11, %v141_v13  ;;  %v181_v61 = vpop.f32.mrf.mxu2 }
  0x95   :  { %v182_v63 = vadd.f32 %v458_v59, %v181_v61 }
  0x96   :  { %v150_v16 = vpack.c.bf16 %v142_v15, %v142_v15 }
  0x97   :  { %v191_v0 = vpack.c.bf16 %v182_v63, %v182_v63 }
  0x98   :  { %v199_v18 = vunpack.c.l.b16 %v150_v16 }
  0x99   :  { %v235_v5 = vunpack.c.l.b16 %v191_v0 }
  0x9a   :  { %v200_v20 = vpack.c.b16 %v199_v18, %v198_v17 }
  0x9b   :  { %v144_v21 = vpop.f32.mrf.mxu1 }
  0x9c   :  { %v205_v23 = vsel %vm73_vm1, %v200_v20, 0  ;;  %v145_v25 = vadd.f32 %v456_v11, %v144_v21  ;;  %v183_v1 = vpop.f32.mrf.mxu2 }
  0x9d   :  { %214 = vmatpush.bf16.xpose.msra.mxu3 %v205_v23  ;;  %v184_v2 = vadd.f32 %v458_v59, %v183_v1 }
  0x9e   :  { %v151_v28 = vpack.c.bf16 %v145_v25, %v145_v25 }
  0x9f   :  { %v192_v6 = vpack.c.bf16 %v184_v2, %v184_v2 }
  0xa0   :  { %v258_v31 = vunpack.c.l.b16 %v151_v28  ;;  %v455_v28 = vld [vmem:[%s629_s10 + $0x8] sm:$0xff] }
  0xa1   :  { %v236_v8 = vunpack.c.l.b16 %v192_v6  ;;  %341 = vmatpush.bf16.msrb.mxu1 %v455_v28 }
  0xa3   :  { %v146_v27 = vpop.f32.mrf.mxu1  ;;  %v237_v9 = vpack.c.b16 %v236_v8, %v235_v5 }
  0xa4   :  { %v147_v29 = vadd.f32 %v456_v11, %v146_v27  ;;  %423 = vmatmul.msk.bf16.vlgmr.msra.gmra.mxu3 %vm73_vm1, %v91_v26  ;;  %v186_v10 = vpop.f32.mrf.mxu2 }
  0xa5   :  { %249 = vmatpush.bf16.msrb.mxu0 %v237_v9  ;;  %v187_v11 = vadd.f32 %v458_v59, %v186_v10 }
  0xa6   :  { %v152_v30 = vpack.c.bf16 %v147_v29, %v147_v29  ;;  %v452_v29 = vld [vmem:[%s628_s9] sm:$0xff] }
  0xa7   :  { %v193_v12 = vpack.c.bf16 %v187_v11, %v187_v11  ;;  %371 = vmatpush.bf16.msrb.mxu2 %v452_v29 }
  0xa8   :  { %v259_v32 = vunpack.c.l.b16 %v152_v30  ;;  %v454_v30 = vld [vmem:[%s629_s10] sm:$0xff] }
  0xa9   :  { %v294_v15 = vunpack.c.l.b16 %v193_v12  ;;  %342 = vmatpush.bf16.msrb.mxu1 %v454_v30 }
  0xaa   :  { %v260_v33 = vpack.c.b16 %v259_v32, %v258_v31 }
  0xac   :  { %v265_v35 = vsel %vm73_vm1, %v260_v33, 0  ;;  %v188_v13 = vpop.f32.mrf.mxu2  ;;  %435 = vmatmul.msk.bf16.vlgmr.msrb.gmra.mxu1 %vm73_vm1, %v549_v7 }
  0xad   :  { %274 = vmatpush.bf16.xpose.msrb.mxu3 %v265_v35  ;;  %v189_v14 = vadd.f32 %v458_v59, %v188_v13 }
  0xaf   :  { %v194_v16 = vpack.c.bf16 %v189_v14, %v189_v14 }
  0xb1   :  { %v295_v17 = vunpack.c.l.b16 %v194_v16 }
  0xb3   :  { %v296_v18 = vpack.c.b16 %v295_v17, %v294_v15 }
  0xb4   :  { %425 = vmatmul.msk.bf16.vlgmr.msrb.gmra.mxu3 %vm73_vm1, %v92_v37  ;;  %v459_v37 = vld [vmem:[%s630_s11] ss:$0 sm:$0xff] }
  0xb5   :  { %308 = vmatpush.bf16.msra.mxu0 %v296_v18 }
 0x127   :  { %v216_v44 = vpop.f32.mrf.mxu3 }
 0x128   :  { %v217_v45 = vadd.f32 %v216_v44, %v195_v42 }
 0x129   :  { %v344_v36 = vpop.f32.mrf.mxu1 }
 0x12a   :  { %v221_v46 = vsel %vm220_vm3, %v217_v45, -inf }
 0x12b   :  { %222 = vmax.xlane.f32.xlu0 %v221_v46 }
 0x12f   :  { %v218_v47 = vpop.f32.mrf.mxu3 }
 0x131   :  { %v346_v7 = vpop.f32.mrf.mxu1 }
 0x137   :  { %v276_v49 = vpop.f32.mrf.mxu3 }
 0x138   :  { %v277_v50 = vadd.f32 %v276_v49, %v255_v48 }
 0x13a   :  { %v280_v51 = vsel %vm220_vm3, %v277_v50, -inf }
 0x13b   :  { %281 = vmax.xlane.f32.xlu0 %v280_v51 }
 0x13f   :  { %v278_v52 = vpop.f32.mrf.mxu3 }
 0x19e   :  { %v223_v53 = vpop.xlane.xlu0 %222 }
 0x19f   :  { %v224_v54 = vsub.f32 %v217_v45, %v223_v53 }
 0x1a1   :  { %v225_v55 = vmul.f32 1.442695, %v224_v54 }
 0x1a3   :  { %460 = vpow2.f32 %v225_v55 }
 0x1a9   :  { %v461_v56 = vpop.eup %460 }
 0x1aa   :  { %v227_v57 = vsel %vm220_vm3, %v461_v56, 0.0 }
 0x1ab   :  { %228 = vadd.xlane.f32.xlu1 %v227_v57 }
 0x1ae   :  { %v282_v58 = vpop.xlane.xlu0 %281 }
 0x1af   :  { %v283_v60 = vsub.f32 %v277_v50, %v282_v58 }
 0x1b1   :  { %v284_v62 = vmul.f32 1.442695, %v283_v60 }
 0x1b3   :  { %462 = vpow2.f32 %v284_v62 }
 0x1b9   :  { %v463_v3 = vpop.eup %462 }
 0x1ba   :  { %v286_v4 = vsel %vm220_vm3, %v463_v3, 0.0 }
 0x1bb   :  { %287 = vadd.xlane.f32.xlu1 %v286_v4 }
 0x21e   :  { %v229_v20 = vpop.xlane.xlu1 %228 }
 0x21f   :  { %464 = vrcp.f32 %v229_v20 }
 0x225   :  { %v465_v21 = vpop.eup %464 }
 0x226   :  { %v231_v22 = vmul.f32 %v465_v21, %v461_v56 }
 0x228   :  { %v232_v23 = vpack.c.bf16 %v231_v22, %v231_v22 }
 0x22a   :  { %424 = vmatmul.msk.bf16.vlgmr.msrb.gmra.mxu0 %vm220_vm3, %v232_v23 }
 0x22e   :  { %v288_v24 = vpop.xlane.xlu1 %287 }
 0x22f   :  { %466 = vrcp.f32 %v288_v24 }
 0x235   :  { %v467_v25 = vpop.eup %466 }
 0x236   :  { %v290_v26 = vmul.f32 %v467_v25, %v463_v3 }
 0x238   :  { %v291_v27 = vpack.c.bf16 %v290_v26, %v290_v26 }
 0x23a   :  { %426 = vmatmul.msk.bf16.vlgmr.msra.gmra.mxu0 %vm220_vm3, %v291_v27 }
 0x2a7   :  { %v251_v31 = vpop.f32.mrf.mxu0 }
 0x2af   :  { %v253_v32 = vpop.f32.mrf.mxu0 }
 0x2b7   :  { %v310_v33 = vpop.f32.mrf.mxu0 }
 0x2b8   :  { %v314_v34 = vpack.c.bf16 %v310_v33, %v251_v31 }
 0x2ba   :  { %444 = vmatmul.msk.bf16.vlgmr.msrb.gmra.mxu2 %vm73_vm1, %v314_v34 }
 0x2bf   :  { %v312_v35 = vpop.f32.mrf.mxu0 }
 0x33d   :  { %v373_v38 = vpop.f32.mrf.mxu2 }
 0x33e   :  { %v374_v39 = vadd.f32 %v373_v38, %v344_v36 }
 0x340   :  { %v382_v40 = vadd.f32 %v459_v37, %v374_v39 }
 0x342   :  { %384 = vst [vmem:[%s631_s12] sm:$0xff] %v382_v40 }
 0x345   :  { %v375_v41 = vpop.f32.mrf.mxu2 }
 0x346   :  { %v376_v42 = vadd.f32 %v375_v41, %v346_v7 }
 0x348   :  { %v383_v43 = vadd.f32 %v459_v37, %v376_v42 }
 0x34a   :  { %385 = vst [vmem:[%s631_s12 + $0x8] sm:$0xff] %v383_v43 }

</bundles_post_ra>
